<compile_context>
chip_gen: v6e
topology: v6e:2x2x1
jax: 0.10.0
libtpu: 0.0.40
codegen_flags: <defaults>
</compile_context>

<pallas_src>
import jax
import jax.numpy as jnp
from jax.experimental import pallas as pl
from jax.experimental.pallas import tpu as pltpu


# ---------------------------------------------------------------------------
# Pallas kernel: fused 1x1-conv (as transposed matmul) + BN shift + ReLU
# ---------------------------------------------------------------------------
def _conv_bn_relu_kernel(x_ref, w_ref, shift_ref, o_ref):
    # x_ref:     (1, Cin, tm)  pixel tile of one image, channels-first
    # w_ref:     (C, Cin)      1x1 conv weight with BN scale folded in
    # shift_ref: (C, 1)        folded BN shift (beta - mean * gamma / std)
    # o_ref:     (1, C, tm)    lane-dense output tile (lanes = pixels)
    x = x_ref[0]              # (Cin, tm)
    w = w_ref[...]            # (C, Cin)
    shift = shift_ref[...]    # (C, 1)

    cin = x.shape[0]
    if cin <= 32:
        # VPU sum-of-outer-products: MXU would be ~idle with K this small.
        acc = w[:, 0:1] * x[0:1, :]
        for k in range(1, cin):
            acc = acc + w[:, k:k + 1] * x[k:k + 1, :]
    else:
        acc = jnp.dot(w, x, preferred_element_type=jnp.float32)

    y = acc + shift                      # (C, tm), shift broadcast over lanes
    o_ref[0] = jnp.maximum(y, 0.0).astype(o_ref.dtype)


def _pick_tile(hw, cin, c, *, tm_target=1024,
               tile_budget_bytes=24 * 1024 * 1024):
    """Largest lane tile (multiple of 128) whose double-buffered in+out tiles
    fit a VMEM budget that is safe on v5e/v6e/v7x."""
    if hw <= 128:
        return hw                        # full dim satisfies the (8,128) rule
    tm = 128
    for cand in (2048, 1024, 512, 256, 128):
        if cand <= tm_target and 2 * (cin + c) * cand * 4 <= tile_budget_bytes:
            tm = cand
            break
    hw_pad = ((hw + 127) // 128) * 128   # no point exceeding one image row
    return min(tm, hw_pad)


def conv1x1_bn_relu(x3, w_folded, shift, *, tm_target=1024):
    """x3: (B, Cin, HW) f32; w_folded: (C, Cin); shift: (C, 1) -> (B, C, HW)."""
    B, Cin, HW = x3.shape
    C = w_folded.shape[0]

    tm = _pick_tile(HW, Cin, C, tm_target=tm_target)
    n_t = pl.cdiv(HW, tm)

    # Explicit VMEM budget: double-buffered in/out tiles + constants + margin.
    tile_bytes = (Cin + C) * tm * 4
    const_bytes = (C * Cin + C) * 4
    vmem_limit = int(min(48 * 1024 * 1024,
                         max(2 * tile_bytes + 2 * const_bytes + (8 << 20),
                             16 * 1024 * 1024)))

    return pl.pallas_call(
        _conv_bn_relu_kernel,
        out_shape=jax.ShapeDtypeStruct((B, C, HW), x3.dtype),
        grid_spec=pltpu.PrefetchScalarGridSpec(
            num_scalar_prefetch=0,
            grid=(B, n_t),
            in_specs=[
                pl.BlockSpec((1, Cin, tm), lambda b, t: (b, 0, t)),
                pl.BlockSpec((C, Cin), lambda b, t: (0, 0)),
                pl.BlockSpec((C, 1), lambda b, t: (0, 0)),
            ],
            out_specs=pl.BlockSpec((1, C, tm), lambda b, t: (b, 0, t)),
        ),
        compiler_params=pltpu.CompilerParams(
            dimension_semantics=("parallel", "parallel"),
            vmem_limit_bytes=vmem_limit),
    )(x3, w_folded, shift)


# ---------------------------------------------------------------------------
# Module wrapper (fold BN, run kernel, single pixel-shuffle transpose)
# ---------------------------------------------------------------------------
def pixel_shuffle_v3(x_nchw, conv_w, gamma, beta, run_mean, run_var,
                     *, scale=2, eps=1e-3):
    B, Cin, H, W = x_nchw.shape
    C = conv_w.shape[0]                  # = out_channels * scale * scale
    s = scale
    Cout = C // (s * s)
    HW = H * W

    # Fold eval-mode BatchNorm: scale goes into the weight, shift stays.
    inv_std = 1.0 / jnp.sqrt(run_var + eps)
    bn_scale = (gamma * inv_std).astype(jnp.float32)            # (C,)
    w_folded = (conv_w.reshape(C, Cin).astype(jnp.float32)
                * bn_scale[:, None])                             # (C, Cin)
    shift = (beta - run_mean * bn_scale).reshape(C, 1).astype(jnp.float32)

    # Native NCHW layout, zero-cost reshape to (B, Cin, H*W).
    x3 = x_nchw.astype(jnp.float32).reshape(B, Cin, HW)

    y = conv1x1_bn_relu(x3, w_folded, shift)                     # (B, C, HW)

    # Pixel shuffle:
    #   out[b, m, h*s+p, w*s+q] = y[b, (q*s+p)*Cout + m, h, w]
    # -> split channel axis as (q, p, m), one transpose, reshape.
    y6 = y.reshape(B, s, s, Cout, H, W)          # (b, q, p, m, h, w)
    out = y6.transpose(0, 3, 4, 2, 5, 1)         # (b, m, h, p, w, q)
    return out.reshape(B, Cout, H * s, W * s)


# ---------------------------------------------------------------------------
# Pure-JAX reference (mirrors the torch forward exactly)
# ---------------------------------------------------------------------------
def pixel_shuffle_v3_ref(x_nchw, conv_w, gamma, beta, run_mean, run_var,
                         *, scale=2, eps=1e-3):
    B, Cin, H, W = x_nchw.shape
    C = conv_w.shape[0]
    s = scale
    w = conv_w.reshape(C, Cin)
    y = jnp.einsum('bihw,ci->bchw', x_nchw, w)
    inv_std = 1.0 / jnp.sqrt(run_var + eps)
    y = (y - run_mean[None, :, None, None]) * inv_std[None, :, None, None]
    y = y * gamma[None, :, None, None] + beta[None, :, None, None]
    y = jnp.maximum(y, 0.0)
    t = y.transpose(0, 2, 3, 1)
    t = t.reshape(B, H, W * s, C // s)
    t = t.transpose(0, 2, 1, 3)
    t = t.reshape(B, W * s, H * s, C // (s * s))
    return t.transpose(0, 3, 2, 1)


if __name__ == "__main__":
    key = jax.random.PRNGKey(0)
    B, Cin, H, W = 2, 4, 16, 16
    out_channels, scale = 4, 2
    C = out_channels * scale * scale

    k_x, k_w, k_g, k_b, k_m, k_v = jax.random.split(key, 6)
    x = jax.random.normal(k_x, (B, Cin, H, W), dtype=jnp.float32)
    conv_w = 0.1 * jax.random.normal(k_w, (C, Cin, 1, 1), dtype=jnp.float32)
    gamma = 0.5 + jax.random.uniform(k_g, (C,), dtype=jnp.float32)
    beta = 0.1 * jax.random.normal(k_b, (C,), dtype=jnp.float32)
    run_mean = 0.05 * jax.random.normal(k_m, (C,), dtype=jnp.float32)
    run_var = 0.5 + jax.random.uniform(k_v, (C,), dtype=jnp.float32)

    out = pixel_shuffle_v3(x, conv_w, gamma, beta, run_mean, run_var,
                           scale=scale, eps=1e-3)
    out = jax.block_until_ready(out)

    ref = pixel_shuffle_v3_ref(x, conv_w, gamma, beta, run_mean, run_var,
                               scale=scale, eps=1e-3)
    assert out.shape == (B, out_channels, H * scale, W * scale), out.shape
    assert jnp.allclose(out, ref, atol=1e-5, rtol=1e-5), \
        float(jnp.max(jnp.abs(out - ref)))

    print("KERNEL_OK")
</pallas_src>

<mosaic_0001>
module attributes {stable_mosaic.version = 11 : i64} {
  func.func @_conv_bn_relu_kernel(%arg0: i32, %arg1: i32, %arg2: memref<1x4x256xf32, #tpu.memory_space<vmem>>, %arg3: memref<16x4xf32, #tpu.memory_space<vmem>>, %arg4: memref<16x1xf32, #tpu.memory_space<vmem>>, %arg5: memref<1x16x256xf32, #tpu.memory_space<vmem>>) attributes {dimension_semantics = [#tpu.dimension_semantics<parallel>, #tpu.dimension_semantics<parallel>], iteration_bounds = array<i64: 2, 1>, scalar_prefetch = 0 : i64, scratch_operands = 0 : i64, tpu.core_type = #tpu.core_type<tc>, window_params = [{transform_indices = @transform_0, window_bounds = array<i64: 1, 4, 256>}, {pipeline_mode = #tpu.pipeline_mode<synchronous>, transform_indices = @transform_1, window_bounds = array<i64: 16, 4>}, {pipeline_mode = #tpu.pipeline_mode<synchronous>, transform_indices = @transform_2, window_bounds = array<i64: 16, 1>}, {transform_indices = @transform_3, window_bounds = array<i64: 1, 16, 256>}]} {
    %c0 = arith.constant 0 : index
    %c0_0 = arith.constant 0 : index
    %c0_1 = arith.constant 0 : index
    %0 = vector.load %arg2[%c0, %c0_0, %c0_1] : memref<1x4x256xf32, #tpu.memory_space<vmem>>, vector<1x4x256xf32>
    %1 = vector.shape_cast %0 : vector<1x4x256xf32> to vector<4x256xf32>
    %c0_2 = arith.constant 0 : index
    %c0_3 = arith.constant 0 : index
    %2 = vector.load %arg3[%c0_2, %c0_3] : memref<16x4xf32, #tpu.memory_space<vmem>>, vector<16x4xf32>
    %c0_4 = arith.constant 0 : index
    %c0_5 = arith.constant 0 : index
    %3 = vector.load %arg4[%c0_4, %c0_5] : memref<16x1xf32, #tpu.memory_space<vmem>>, vector<16x1xf32>
    %4 = vector.extract_strided_slice %2 {offsets = [0, 0], sizes = [16, 1], strides = [1, 1]} : vector<16x4xf32> to vector<16x1xf32>
    %5 = vector.extract_strided_slice %1 {offsets = [0, 0], sizes = [1, 256], strides = [1, 1]} : vector<4x256xf32> to vector<1x256xf32>
    %6 = vector.broadcast %4 : vector<16x1xf32> to vector<16x256xf32>
    %7 = vector.broadcast %5 : vector<1x256xf32> to vector<16x256xf32>
    %8 = arith.mulf %6, %7 : vector<16x256xf32>
    %9 = vector.extract_strided_slice %2 {offsets = [0, 1], sizes = [16, 1], strides = [1, 1]} : vector<16x4xf32> to vector<16x1xf32>
    %10 = vector.extract_strided_slice %1 {offsets = [1, 0], sizes = [1, 256], strides = [1, 1]} : vector<4x256xf32> to vector<1x256xf32>
    %11 = vector.broadcast %9 : vector<16x1xf32> to vector<16x256xf32>
    %12 = vector.broadcast %10 : vector<1x256xf32> to vector<16x256xf32>
    %13 = arith.mulf %11, %12 : vector<16x256xf32>
    %14 = arith.addf %8, %13 : vector<16x256xf32>
    %15 = vector.extract_strided_slice %2 {offsets = [0, 2], sizes = [16, 1], strides = [1, 1]} : vector<16x4xf32> to vector<16x1xf32>
    %16 = vector.extract_strided_slice %1 {offsets = [2, 0], sizes = [1, 256], strides = [1, 1]} : vector<4x256xf32> to vector<1x256xf32>
    %17 = vector.broadcast %15 : vector<16x1xf32> to vector<16x256xf32>
    %18 = vector.broadcast %16 : vector<1x256xf32> to vector<16x256xf32>
    %19 = arith.mulf %17, %18 : vector<16x256xf32>
    %20 = arith.addf %14, %19 : vector<16x256xf32>
    %21 = vector.extract_strided_slice %2 {offsets = [0, 3], sizes = [16, 1], strides = [1, 1]} : vector<16x4xf32> to vector<16x1xf32>
    %22 = vector.extract_strided_slice %1 {offsets = [3, 0], sizes = [1, 256], strides = [1, 1]} : vector<4x256xf32> to vector<1x256xf32>
    %23 = vector.broadcast %21 : vector<16x1xf32> to vector<16x256xf32>
    %24 = vector.broadcast %22 : vector<1x256xf32> to vector<16x256xf32>
    %25 = arith.mulf %23, %24 : vector<16x256xf32>
    %26 = arith.addf %20, %25 : vector<16x256xf32>
    %27 = vector.broadcast %3 : vector<16x1xf32> to vector<16x256xf32>
    %28 = arith.addf %26, %27 : vector<16x256xf32>
    %cst = arith.constant 0.000000e+00 : f32
    %29 = vector.broadcast %cst : f32 to vector<16x256xf32>
    %30 = arith.maximumf %28, %29 : vector<16x256xf32>
    %c0_6 = arith.constant 0 : index
    %c0_7 = arith.constant 0 : index
    %c0_8 = arith.constant 0 : index
    %31 = vector.load %arg5[%c0_6, %c0_7, %c0_8] : memref<1x16x256xf32, #tpu.memory_space<vmem>>, vector<1x16x256xf32>
    %32 = vector.shape_cast %31 : vector<1x16x256xf32> to vector<16x256xf32>
    %33 = vector.shape_cast %30 : vector<16x256xf32> to vector<1x16x256xf32>
    tpu.vector_store %arg5[%c0_6, %c0_7, %c0_8], %33 {strides = array<i32>} : memref<1x16x256xf32, #tpu.memory_space<vmem>>, vector<1x16x256xf32>,
    return
  }
  func.func @transform_0(%arg0: i32, %arg1: i32) -> (i32, i32, i32) {
    %c0_i32 = arith.constant 0 : i32
    %c0_i32_0 = arith.constant 0 : i32
    return %arg0, %c0_i32, %arg1 : i32, i32, i32
  }
  func.func @transform_1(%arg0: i32, %arg1: i32) -> (i32, i32) {
    %c0_i32 = arith.constant 0 : i32
    %c0_i32_0 = arith.constant 0 : i32
    %c0_i32_1 = arith.constant 0 : i32
    return %c0_i32, %c0_i32_0 : i32, i32
  }
  func.func @transform_2(%arg0: i32, %arg1: i32) -> (i32, i32) {
    %c0_i32 = arith.constant 0 : i32
    %c0_i32_0 = arith.constant 0 : i32
    %c0_i32_1 = arith.constant 0 : i32
    return %c0_i32, %c0_i32_0 : i32, i32
  }
  func.func @transform_3(%arg0: i32, %arg1: i32) -> (i32, i32, i32) {
    %c0_i32 = arith.constant 0 : i32
    %c0_i32_0 = arith.constant 0 : i32
    return %arg0, %c0_i32, %arg1 : i32, i32, i32
  }
}

</mosaic_0001>

<bundles_post_ra>
// kernel: tpu_custom_call.1
= control target key start
LH: loop header
LB: loop body
LE: loop exit
PB: predicated region body
PF: predicated region fallthrough
CT: control target
= control target key end

     0   :  { %8 = vsyncpa [#allocation3], 0  ;;  %s776_s0 = inlined_call_operand.vmem [shape: f32[2,4,256], index: 0, kind: input, shape index: {}]   ;;  %s777_s1 = inlined_call_operand.vmem [shape: f32[16,4], index: 1, kind: input, shape index: {}]   ;;  %s778_s2 = inlined_call_operand.vmem [shape: f32[16,1], index: 2, kind: input, shape index: {}]   ;;  %s779_s3 = inlined_call_operand.hbm [shape: f32[2,16,256], index: 3, kind: output, shape index: {}]  }
   0x1   :  { %10 = vsyncpa [#allocation3 + $0x1], 0  ;;  %s646_s12 = smov 0   ;;  %s648_s13 = smov 0  }
   0x2   :  { %s650_s14 = smov 0   ;;  %s652_s15 = smov 0  }
   0x3   :  { %s654_s16 = smov 0   ;;  %s656_s17 = smov 0  }
   0x4 LB: > { %s457_s18 = sadd.s32 4294967295, %s617_s17   ;;  %s458_s19 = sadd.s32 4294967294, %s617_s17   ;;  %s617_s17 = sphi %s656_s17, %s16_s17   ;;  %s613_s16 = sphi %s654_s16, %s786_s16   ;;  %s609_s15 = sphi %s652_s15, %s785_s15   ;;  %s605_s14 = sphi %s650_s14, %s784_s14   ;;  %s601_s13 = sphi %s648_s13, %s783_s13   ;;  %s597_s12 = sphi %s646_s12, %s782_s12  }
   0x5   : > { %s28_s20 = sadd.s32 1, %s613_s16  ;;  %s107_s21 = sadd.s32 1, %s605_s14 }
   0x6   : > { %p30_p0 = scmp.ge.s32.totalorder %s28_s20, 2  ;;  %p117_p1 = scmp.ne.s32.totalorder %s605_s14, %s601_s13 }
   0x7   : > { %p118_p2 = scmp.eq.s32.totalorder %s457_s18, 1  ;;  %p123_p3 = scmp.ne.s32.totalorder %s601_s13, %s597_s12 }
   0x8   : > { %s788_s20 = smov (%p30_p0, %s28_s20), 0  ;;  %p124_p5 = scmp.eq.s32.totalorder %s458_s19, 1 }
   0x9   : > { %p686_p4 = por %p118_p2, %p117_p1  ;;  %s102_s23 = ssub.s32 %s613_s16, %s788_s20 }
   0xa   : > { %p461_p6 = scmp.ge.s32.totalorder %s617_s17, 1  ;;  %p105_p7 = scmp.eq.s32.totalorder %s102_s23, 0 }
   0xb   : > { %p693_p8 = por %p124_p5, %p123_p3  ;;  %p161_p9 = scmp.lt.s32.totalorder %s617_s17, 3 }
   0xc   : > { %s699_s25 = scalar_select %p105_p7, %s605_s14, %s107_s21  }
   0xd   : > { %p162_p10 = pnand %p461_p6, %p161_p9 }
   0xe   : > { %p190_p11 = scmp.lt.s32.totalorder (!%p162_p10), %s609_s15, 1  ;;  %s186_s18 = sand.u32 (!%p162_p10), 1, %s601_s13  }
   0xf   : > { %165 = sbr.rel (%p162_p10) target bundleno = 187 (0xbb), region = 32  ;;  %s462_s19 = sshll.u32 (!%p162_p10), %s186_s18, 5 }
  0x10   : > { %s188_s21 = scalar_lea.vmem (!%p162_p10), [#allocation2], %s462_s19  ;;  %s471_s26 = sshll.u32 (!%p162_p10), %s609_s15, 9 }
  0x11   : > { %s378_s23 = sshll.u32 (!%p162_p10), %s188_s21, 4  ;;  %s727_s29 = scalar_lea.hbm (!%p162_p10), %s779_s3, %s471_s26  ;;  %s722_s23 = int_to_ptr.vmem [resolvable:$true] %s378_s23 }
  0x12   : > { %s541_s30 = scalar_lea.vmem (!%p162_p10), %s722_s23, 512  ;;  %s623_s4 = smov (!%p162_p10), [#allocation2]  }
  0x13   : > { %p542_p12 = scmp.ne.s32.totalorder (!%p162_p10), %s722_s23, %s541_s30  ;;  %s545_s5 = sshll.u32 (!%p162_p10), %s623_s4, 4  ;;  %s546_s5 = int_to_ptr.vmem [resolvable:$false] %s545_s5 }
  0x14   : > { %v201_v0 = vld [vmem:[%s777_s1] sm:$0xff]  ;;  %v619_v1 = vmov 1   ;;  %v620_v2 = vmov 0   ;;  %v202_v3 = vld [vmem:[%s777_s1 + $0x8] sm:$0xff]  ;;  %v621_v4 = vmov 2   ;;  %v622_v5 = vmov 3   ;;  %p548_p1 = scmp.lt.s32.totalorder %s722_s23, %s546_s5 }
  0x15   : > { %534 = vset.pattern.permute.xlu1 %v619_v1  ;;  %533 = vset.pattern.permute.xlu0 %v620_v2  ;;  %v203_v6 = vld [vmem:[%s778_s2] sm:$0xff]  ;;  %v204_v7 = vld [vmem:[%s778_s2 + $0x8] sm:$0xff]  ;;  %s191_s7 = scalar_select %p190_p11, %s609_s15, 1  ;;  %v216_v8 = vlaneseq }
  0x16   : > { %239 = vperm.xlu1 %534, %v201_v0   ;;  %207 = vperm.xlu0 %533, %v201_v0   ;;  %s731_s15 = scalar_lea.sflag [#allocation3], %s186_s18  ;;  %p543_p13 = pnand %p542_p12, %p686_p4 }
  0x17   : > { %s470_s8 = sshll.u32 %s191_s7, 3  ;;  %v217_v9 = vshrl.u32 %v216_v8, 7  ;;  %s547_s6 = scalar_lea.vmem %s546_s5, 1024 }
  0x18   : > { %s197_s11 = scalar_lea.vmem %s776_s0, %s470_s8  ;;  %p544_p0 = pneg %p543_p13 }
  0x19   : > { %v248_v10 = vsub.s32 1, %v217_v9  ;;  %v252_v11 = vsub.s32 5, %v217_v9  ;;  %v218_v12 = vsub.s32 0, %v217_v9  ;;  %v222_v13 = vsub.s32 4, %v217_v9  ;;  %v200_v14 = vld [vmem:[%s197_s11] sm:$0xff]  ;;  %p549_p2 = scmp.lt.s32.totalorder %s547_s6, %s541_s30 }
  0x1a   : > { %243 = vperm.xlu1 %534, %v202_v3   ;;  %212 = vperm.xlu0 %533, %v202_v3   ;;  %v282_v15 = vsub.s32 2, %v217_v9  ;;  %v286_v16 = vsub.s32 6, %v217_v9  ;;  %v316_v25 = vsub.s32 3, %v217_v9  ;;  %v320_v26 = vsub.s32 7, %v217_v9 }
  0x1b   : > { %v249_v19 = vrot.slane %v200_v14, %v248_v10  ;;  %v253_v20 = vrot.slane %v200_v14, %v252_v11  ;;  %v219_v21 = vrot.slane %v200_v14, %v218_v12  ;;  %v223_v22 = vrot.slane %v200_v14, %v222_v13  ;;  %p550_p3 = por %p549_p2, %p548_p1 }
  0x1c   : > { %v283_v23 = vrot.slane %v200_v14, %v282_v15  ;;  %v287_v24 = vrot.slane %v200_v14, %v286_v16  ;;  %v317_v35 = vrot.slane %v200_v14, %v316_v25  ;;  %v321_v36 = vrot.slane %v200_v14, %v320_v26 }
  0x1d   : > { %v259_v29 = vrot.slane %v249_v19, %v248_v10  ;;  %v263_v30 = vrot.slane %v253_v20, %v248_v10  ;;  %v229_v31 = vrot.slane %v219_v21, %v218_v12  ;;  %v233_v32 = vrot.slane %v223_v22, %v218_v12  ;;  %p551_p5 = pnand %p550_p3, %p544_p0 }
  0x1e   : > { %536 = vset.pattern.permute.xlu1 %v621_v4  ;;  %535 = vset.pattern.permute.xlu0 %v621_v4  ;;  %v293_v33 = vrot.slane %v283_v23, %v282_v15  ;;  %v297_v34 = vrot.slane %v287_v24, %v282_v15  ;;  %v327_v45 = vrot.slane %v317_v35, %v316_v25 }
  0x1f   : > { %277 = vperm.xlu1 %536, %v202_v3   ;;  %273 = vperm.xlu0 %535, %v201_v0   ;;  %v331_v46 = vrot.slane %v321_v36, %v316_v25 }
  0x23   : > { %537 = vset.pattern.permute.xlu1 %v622_v5  ;;  %538 = vset.pattern.permute.xlu0 %v622_v5 }
  0x24   : > { %307 = vperm.xlu1 %537, %v201_v0   ;;  %311 = vperm.xlu0 %538, %v202_v3  }
  0x28   : > { %539 = vset.pattern.permute.xlu1 %v620_v2  ;;  %540 = vset.pattern.permute.xlu0 %v620_v2 }
  0x29   : > { %342 = vperm.xlu1 %539, %v203_v6  }
  0x2d   : > { %347 = vperm.xlu1 %539, %v204_v7  }
  0x91   : > { %v240_v17 = vpop.permute.xlu1 %239  ;;  %v208_v18 = vpop.permute.xlu0 %207 }
  0x92   : > { %v264_v37 = vmul.f32 %v259_v29, %v240_v17  ;;  %v265_v38 = vmul.f32 %v263_v30, %v240_v17  ;;  %v234_v39 = vmul.f32 %v229_v31, %v208_v18  ;;  %v235_v40 = vmul.f32 %v233_v32, %v208_v18 }
  0x94   : > { %v268_v47 = vadd.f32 %v264_v37, %v234_v39  ;;  %v269_v48 = vadd.f32 %v265_v38, %v235_v40 }
  0x95   : > { %v244_v27 = vpop.permute.xlu1 %243  ;;  %v213_v28 = vpop.permute.xlu0 %212 }
  0x96   : > { %v266_v49 = vmul.f32 %v259_v29, %v244_v27  ;;  %v267_v50 = vmul.f32 %v263_v30, %v244_v27  ;;  %v236_v51 = vmul.f32 %v229_v31, %v213_v28  ;;  %v237_v52 = vmul.f32 %v233_v32, %v213_v28 }
  0x98   : > { %v270_v63 = vadd.f32 %v266_v49, %v236_v51  ;;  %v271_v0 = vadd.f32 %v267_v50, %v237_v52 }
  0x9a   : > { %v278_v41 = vpop.permute.xlu1 %277  ;;  %v274_v42 = vpop.permute.xlu0 %273 }
  0x9b   : > { %v298_v43 = vmul.f32 %v293_v33, %v274_v42  ;;  %v299_v44 = vmul.f32 %v297_v34, %v274_v42  ;;  %v300_v59 = vmul.f32 %v293_v33, %v278_v41  ;;  %v301_v60 = vmul.f32 %v297_v34, %v278_v41 }
  0x9d   : > { %v302_v54 = vadd.f32 %v298_v43, %v268_v47  ;;  %v303_v55 = vadd.f32 %v299_v44, %v269_v48  ;;  %v304_v4 = vadd.f32 %v300_v59, %v270_v63  ;;  %v305_v5 = vadd.f32 %v301_v60, %v271_v0 }
  0x9f   : > { %v308_v53 = vpop.permute.xlu1 %307  ;;  %v312_v58 = vpop.permute.xlu0 %311 }
  0xa0   : > { %v332_v56 = vmul.f32 %v327_v45, %v308_v53  ;;  %v333_v57 = vmul.f32 %v331_v46, %v308_v53  ;;  %v334_v1 = vmul.f32 %v327_v45, %v312_v58  ;;  %v335_v2 = vmul.f32 %v331_v46, %v312_v58 }
  0xa2   : > { %v336_v61 = vadd.f32 %v332_v56, %v302_v54  ;;  %v337_v62 = vadd.f32 %v333_v57, %v303_v55  ;;  %v338_v10 = vadd.f32 %v334_v1, %v304_v4  ;;  %v339_v11 = vadd.f32 %v335_v2, %v305_v5 }
  0xa4   : > { %v343_v3 = vpop.permute.xlu1 %342 }
  0xa5   : > { %v350_v6 = vadd.f32 %v343_v3, %v336_v61  ;;  %v351_v7 = vadd.f32 %v343_v3, %v337_v62 }
  0xa7   : > { %v354_v8 = vmax.f32 %v350_v6, 0.0  ;;  %v355_v9 = vmax.f32 %v351_v7, 0.0 }
  0xa8   : > { %v348_v12 = vpop.permute.xlu1 %347 }
  0xa9   : > { %358 = vst [vmem:[%s188_s21] sm:$0xff] %v354_v8  ;;  %359 = vst [vmem:[%s188_s21 + $0x8] sm:$0xff] %v355_v9  ;;  %v352_v13 = vadd.f32 %v348_v12, %v338_v10  ;;  %v353_v14 = vadd.f32 %v348_v12, %v339_v11 }
  0xab   : > { %v356_v15 = vmax.f32 %v352_v13, 0.0  ;;  %v357_v16 = vmax.f32 %v353_v14, 0.0 }
  0xad   : > { %360 = vst [vmem:[%s188_s21 + $0x10] sm:$0xff] %v356_v15  ;;  %361 = vst [vmem:[%s188_s21 + $0x18] sm:$0xff] %v357_v16 }
  0xae   : > { %554 = shalt.err (!%p551_p5)
}
  0xaf   : > { %s555_s7 = scalar_lea.hbm %s727_s29, 512  ;;  %s559_s10 = scalar_lea.hbm %s779_s3, 1024 }
  0xb0   : > { %p556_p6 = scmp.ne.s32.totalorder %s727_s29, %s555_s7  ;;  %p560_p10 = scmp.lt.s32.totalorder %s727_s29, %s779_s3 }
  0xb1   : > { %p561_p11 = scmp.lt.s32.totalorder %s559_s10, %s555_s7 }
  0xb2   : > { %p557_p7 = pnand %p556_p6, %p686_p4 }
  0xb3   : > { %p562_p12 = por %p561_p11, %p560_p10 }
  0xb4   : > { %p558_p9 = pneg %p557_p7 }
  0xb6   : > { %p563_p13 = pnand %p562_p12, %p558_p9 }
  0xb8   : > { %566 = shalt.err (!%p563_p13)
}
  0xb9   : > { %s624_s19 = smov 256   ;;  %s625_s21 = smov 16  }
  0xba   : > { %472 = dma.vmem_to_hbm [thread:$0]  (%p686_p4), %s722_s23, 512, %s727_s29, %s731_s15, %s624_s19, %s624_s19, %s625_s21  }
  0xbb PF: > { %p478_p0 = scmp.ge.s32.totalorder %s617_s17, 2  ;;  %s393_s26 = sand.u32 1, %s597_s12  }
  0xbc   : > { %s394_s27 = scalar_lea.sflag [#allocation3], %s393_s26 }
  0xbd   : > { %p475_p1 = pnand %p478_p0, %p693_p8 }
  0xbf   : > { %p476_p2 = pneg %p475_p1 }
  0xc1   : > { %592 = dma.done.wait (%p476_p2), %s394_s27, 512  }
  0xc2   : > { %594 = vsyncadd (%p476_p2), %s394_s27, 4294966784  ;;  %s16_s17 = sadd.s32 1, %s617_s17   ;;  %s782_s12 = smov %s601_s13 }
  0xc3   : > { %p13_p3 = scmp.ge.s32.totalorder %s16_s17, 4   ;;  %s783_s13 = smov %s605_s14 }
  0xc4   : > { %s784_s14 = smov %s699_s25  ;;  %s785_s15 = smov %s613_s16 }
  0xc5   : > { %s786_s16 = smov %s788_s20  ;;  %15 = sbr.rel (!%p13_p3) target bundleno = 4 (0x4), region = 67 }
  0xca   :  { %399 = vsyncpa [#allocation3], 1 }
  0xcb   :  { %401 = vsyncpa [#allocation3 + $0x1], 1 }

</bundles_post_ra>
